<compile_context>
chip_gen: v7x
topology: tpu7x:2x2x1
jax: 0.10.0
libtpu: 0.0.40
codegen_flags: <defaults>
</compile_context>

<pallas_src>
import jax
import jax.numpy as jnp
from jax.experimental import pallas as pl
from jax.experimental.pallas import tpu as pltpu

IN_RAW = 28 * 28   # 784 (fc1 contraction dim, left ragged — Mosaic masks it)
H1 = 128
H2 = 64
OUT_RAW = 10
OUT_PAD = 128      # lane-dense logits block (unmasked vst)


def _round_up(x, m):
    return ((x + m - 1) // m) * m


def _mlp_kernel(x_ref, w1_ref, b1_ref, w2_ref, b2_ref, w3_ref, b3_ref, o_ref):
    # x arrives as raw f32; cast to the MXU dtype on the VPU, in VMEM, so HBM
    # only ever carries a single f32 copy of the activations.
    x = x_ref[...].astype(w1_ref.dtype)
    # fc1 (K = 784; Mosaic zero-masks the ragged contraction tail).
    h1 = jnp.dot(x, w1_ref[...], preferred_element_type=jnp.float32)
    h1 = jnp.maximum(h1 + b1_ref[...], 0.0)
    # fc2
    h2 = jnp.dot(h1.astype(w2_ref.dtype), w2_ref[...],
                 preferred_element_type=jnp.float32)
    h2 = jnp.maximum(h2 + b2_ref[...], 0.0)
    # fc3: logits, lane-padded to 128; store as bf16 (shrinks the writeback).
    logits = jnp.dot(h2.astype(w3_ref.dtype), w3_ref[...],
                     preferred_element_type=jnp.float32) + b3_ref[...]
    o_ref[...] = logits.astype(o_ref.dtype)


def _pick_batch_tile(B, block_b):
    """Batch-tile selection.

    * Small batches: one full-extent block (block dim == array dim is always
      layout-legal), no padding at all.
    * Large batches: tile is a multiple of 256 (fills the MXU M dim on
      v6e/v7x; also a 128-multiple for v5e), capped at block_b, and sized so
      the grid has >= 2 steps (so both v7x TensorCores engage).
    The last grid block may be partial; rows are fully independent and only
    rows < B are ever written (out_shape is exactly (B, OUT_PAD)).
    """
    if B <= 512:
        return B
    return min(block_b, _round_up(-(-B // 2), 256))


def medium_mnist_forward(x_nchw, params, *, block_b=2048, use_bf16=True):
    """x_nchw: (B, 1, 28, 28) float32. Returns (B, 10) float32 logits."""
    w1, b1, w2, b2, w3, b3 = params
    B = x_nchw.shape[0]
    # torch x.view(B, -1): row-major flatten.  Keep it as raw f32 — the only
    # HBM pass over the activations is the kernel's own read.
    x = x_nchw.reshape(B, IN_RAW)
    if x.dtype != jnp.float32:
        x = x.astype(jnp.float32)

    mxu_dt = jnp.bfloat16 if use_bf16 else jnp.float32
    out_dt = jnp.bfloat16 if use_bf16 else jnp.float32

    # Weights are tiny (~0.25 MB): cast / lane-pad once; resident in VMEM.
    w1c = w1.astype(mxu_dt)                                              # (784, 128)
    w2c = w2.astype(mxu_dt)                                              # (128, 64)
    w3p = jnp.pad(w3, ((0, 0), (0, OUT_PAD - OUT_RAW))).astype(mxu_dt)   # (64, 128)
    b1f = b1.astype(jnp.float32)                                         # (1, 128)
    b2f = b2.astype(jnp.float32)                                         # (1, 64)
    b3f = jnp.pad(b3, ((0, 0), (0, OUT_PAD - OUT_RAW))).astype(jnp.float32)

    tb = _pick_batch_tile(B, block_b)
    grid = (pl.cdiv(B, tb),)

    flops = 2 * B * (IN_RAW * H1 + H1 * H2 + H2 * OUT_PAD)
    bytes_accessed = (
        B * IN_RAW * 4                                                      # x (f32, read once)
        + (IN_RAW * H1 + H1 * H2 + H2 * OUT_PAD) * jnp.dtype(mxu_dt).itemsize  # weights
        + (H1 + H2 + OUT_PAD) * 4                                           # biases (f32)
        + B * OUT_PAD * jnp.dtype(out_dt).itemsize                          # logits writeback
    )
    cost = pl.CostEstimate(flops=flops, transcendentals=0,
                           bytes_accessed=bytes_accessed)

    out = pl.pallas_call(
        _mlp_kernel,
        out_shape=jax.ShapeDtypeStruct((B, OUT_PAD), out_dt),
        grid=grid,
        in_specs=[
            pl.BlockSpec((tb, IN_RAW), lambda i: (i, 0)),    # x tile (pipelined, raw f32)
            pl.BlockSpec((IN_RAW, H1), lambda i: (0, 0)),    # w1 (resident)
            pl.BlockSpec((1, H1), lambda i: (0, 0)),         # b1
            pl.BlockSpec((H1, H2), lambda i: (0, 0)),        # w2
            pl.BlockSpec((1, H2), lambda i: (0, 0)),         # b2
            pl.BlockSpec((H2, OUT_PAD), lambda i: (0, 0)),   # w3 (lane-padded)
            pl.BlockSpec((1, OUT_PAD), lambda i: (0, 0)),    # b3 (lane-padded)
        ],
        out_specs=pl.BlockSpec((tb, OUT_PAD), lambda i: (i, 0)),
        compiler_params=pltpu.CompilerParams(
            dimension_semantics=("parallel",),
            vmem_limit_bytes=32 * 1024 * 1024,
        ),
        cost_estimate=cost,
    )(x, w1c, b1f, w2c, b2f, w3p, b3f)

    # Drop the padded logit lanes; return f32 logits like the torch module.
    return out[:, :OUT_RAW].astype(jnp.float32)


def init_params(key):
    """Deterministic synthetic params with PyTorch nn.Linear init.

    nn.Linear(in, out) stores weight (out, in); we keep the transposed
    (in, out) layout so the kernel computes x @ W + b == torch's x @ W.T + b.
    """
    ks = jax.random.split(key, 6)

    def linear(kw, kb, fan_in, fan_out):
        bound = 1.0 / jnp.sqrt(jnp.float32(fan_in))
        w = jax.random.uniform(kw, (fan_in, fan_out), jnp.float32, -bound, bound)
        b = jax.random.uniform(kb, (1, fan_out), jnp.float32, -bound, bound)
        return w, b

    w1, b1 = linear(ks[0], ks[1], IN_RAW, H1)
    w2, b2 = linear(ks[2], ks[3], H1, H2)
    w3, b3 = linear(ks[4], ks[5], H2, OUT_RAW)
    return (w1, b1, w2, b2, w3, b3)


def _reference(x_nchw, params, use_bf16=True):
    """Pure-JAX reference mirroring the kernel's precision choices."""
    w1, b1, w2, b2, w3, b3 = params
    x = x_nchw.reshape(x_nchw.shape[0], -1)
    dt = jnp.bfloat16 if use_bf16 else jnp.float32
    h = jnp.dot(x.astype(dt), w1.astype(dt),
                preferred_element_type=jnp.float32) + b1
    h = jnp.maximum(h, 0.0)
    h = jnp.dot(h.astype(dt), w2.astype(dt),
                preferred_element_type=jnp.float32) + b2
    h = jnp.maximum(h, 0.0)
    logits = jnp.dot(h.astype(dt), w3.astype(dt),
                     preferred_element_type=jnp.float32) + b3
    if use_bf16:
        logits = logits.astype(jnp.bfloat16).astype(jnp.float32)
    return logits


if __name__ == "__main__":
    key = jax.random.PRNGKey(0)
    k_x, k_p, k_x2 = jax.random.split(key, 3)

    params = init_params(k_p)

    # Small MNIST-shaped batch (NCHW, like PyTorch).
    x = jax.random.normal(k_x, (2, 1, 28, 28), dtype=jnp.float32)
    out = jax.block_until_ready(medium_mnist_forward(x, params))
    assert out.shape == (2, OUT_RAW), out.shape
    ref = _reference(x, params)
    assert jnp.allclose(out, ref, atol=2e-2, rtol=2e-2), "mismatch vs bf16 reference"
    ref_f32 = _reference(x, params, use_bf16=False)
    assert jnp.allclose(out, ref_f32, atol=5e-2, rtol=5e-2), "mismatch vs f32 reference"

    # Exercise the multi-step grid with a partial (ragged) last block and no
    # batch padding — the path that matters for large-batch performance.
    x2 = jax.random.normal(k_x2, (600, 1, 28, 28), dtype=jnp.float32)
    out2 = jax.block_until_ready(medium_mnist_forward(x2, params))
    assert out2.shape == (600, OUT_RAW), out2.shape
    ref2 = _reference(x2, params)
    assert jnp.allclose(out2, ref2, atol=2e-2, rtol=2e-2), "mismatch (ragged grid)"

    print("KERNEL_OK")
</pallas_src>

<mosaic_0001>
module attributes {stable_mosaic.version = 11 : i64} {
  func.func @_mlp_kernel(%arg0: i32, %arg1: memref<2x784xf32, #tpu.memory_space<vmem>>, %arg2: memref<784x128xbf16, #tpu.memory_space<vmem>>, %arg3: memref<1x128xf32, #tpu.memory_space<vmem>>, %arg4: memref<128x64xbf16, #tpu.memory_space<vmem>>, %arg5: memref<1x64xf32, #tpu.memory_space<vmem>>, %arg6: memref<64x128xbf16, #tpu.memory_space<vmem>>, %arg7: memref<1x128xf32, #tpu.memory_space<vmem>>, %arg8: memref<2x128xbf16, #tpu.memory_space<vmem>>) attributes {dimension_semantics = [#tpu.dimension_semantics<parallel>], iteration_bounds = array<i64: 1>, scalar_prefetch = 0 : i64, scratch_operands = 0 : i64, tpu.core_type = #tpu.core_type<tc>, window_params = [{transform_indices = @transform_0, window_bounds = array<i64: 2, 784>}, {pipeline_mode = #tpu.pipeline_mode<synchronous>, transform_indices = @transform_1, window_bounds = array<i64: 784, 128>}, {pipeline_mode = #tpu.pipeline_mode<synchronous>, transform_indices = @transform_2, window_bounds = array<i64: 1, 128>}, {pipeline_mode = #tpu.pipeline_mode<synchronous>, transform_indices = @transform_3, window_bounds = array<i64: 128, 64>}, {pipeline_mode = #tpu.pipeline_mode<synchronous>, transform_indices = @transform_4, window_bounds = array<i64: 1, 64>}, {pipeline_mode = #tpu.pipeline_mode<synchronous>, transform_indices = @transform_5, window_bounds = array<i64: 64, 128>}, {pipeline_mode = #tpu.pipeline_mode<synchronous>, transform_indices = @transform_6, window_bounds = array<i64: 1, 128>}, {transform_indices = @transform_7, window_bounds = array<i64: 2, 128>}]} {
    %c0 = arith.constant 0 : index
    %c0_0 = arith.constant 0 : index
    %0 = vector.load %arg1[%c0, %c0_0] : memref<2x784xf32, #tpu.memory_space<vmem>>, vector<2x784xf32>
    %1 = arith.truncf %0 : vector<2x784xf32> to vector<2x784xbf16>
    %c0_1 = arith.constant 0 : index
    %c0_2 = arith.constant 0 : index
    %2 = vector.load %arg2[%c0_1, %c0_2] : memref<784x128xbf16, #tpu.memory_space<vmem>>, vector<784x128xbf16>
    %cst = arith.constant dense<0.000000e+00> : vector<2x128xf32>
    %3 = tpu.matmul %1, %2, %cst {dimension_numbers = #tpu.dot_dimension_numbers<[1], [0], [0], [1], [0, 0, 1, 1], [], []>} : vector<2x784xbf16>, vector<784x128xbf16>, vector<2x128xf32> -> vector<2x128xf32>
    %c0_3 = arith.constant 0 : index
    %c0_4 = arith.constant 0 : index
    %4 = vector.load %arg3[%c0_3, %c0_4] : memref<1x128xf32, #tpu.memory_space<vmem>>, vector<1x128xf32>
    %5 = vector.broadcast %4 : vector<1x128xf32> to vector<2x128xf32>
    %6 = arith.addf %3, %5 : vector<2x128xf32>
    %cst_5 = arith.constant 0.000000e+00 : f32
    %7 = vector.broadcast %cst_5 : f32 to vector<2x128xf32>
    %8 = arith.maximumf %6, %7 : vector<2x128xf32>
    %9 = arith.truncf %8 : vector<2x128xf32> to vector<2x128xbf16>
    %c0_6 = arith.constant 0 : index
    %c0_7 = arith.constant 0 : index
    %10 = vector.load %arg4[%c0_6, %c0_7] : memref<128x64xbf16, #tpu.memory_space<vmem>>, vector<128x64xbf16>
    %cst_8 = arith.constant dense<0.000000e+00> : vector<2x64xf32>
    %11 = tpu.matmul %9, %10, %cst_8 {dimension_numbers = #tpu.dot_dimension_numbers<[1], [0], [0], [1], [0, 0, 1, 1], [], []>} : vector<2x128xbf16>, vector<128x64xbf16>, vector<2x64xf32> -> vector<2x64xf32>
    %c0_9 = arith.constant 0 : index
    %c0_10 = arith.constant 0 : index
    %12 = vector.load %arg5[%c0_9, %c0_10] : memref<1x64xf32, #tpu.memory_space<vmem>>, vector<1x64xf32>
    %13 = vector.broadcast %12 : vector<1x64xf32> to vector<2x64xf32>
    %14 = arith.addf %11, %13 : vector<2x64xf32>
    %cst_11 = arith.constant 0.000000e+00 : f32
    %15 = vector.broadcast %cst_11 : f32 to vector<2x64xf32>
    %16 = arith.maximumf %14, %15 : vector<2x64xf32>
    %17 = arith.truncf %16 : vector<2x64xf32> to vector<2x64xbf16>
    %c0_12 = arith.constant 0 : index
    %c0_13 = arith.constant 0 : index
    %18 = vector.load %arg6[%c0_12, %c0_13] : memref<64x128xbf16, #tpu.memory_space<vmem>>, vector<64x128xbf16>
    %cst_14 = arith.constant dense<0.000000e+00> : vector<2x128xf32>
    %19 = tpu.matmul %17, %18, %cst_14 {dimension_numbers = #tpu.dot_dimension_numbers<[1], [0], [0], [1], [0, 0, 1, 1], [], []>} : vector<2x64xbf16>, vector<64x128xbf16>, vector<2x128xf32> -> vector<2x128xf32>
    %c0_15 = arith.constant 0 : index
    %c0_16 = arith.constant 0 : index
    %20 = vector.load %arg7[%c0_15, %c0_16] : memref<1x128xf32, #tpu.memory_space<vmem>>, vector<1x128xf32>
    %21 = vector.broadcast %20 : vector<1x128xf32> to vector<2x128xf32>
    %22 = arith.addf %19, %21 : vector<2x128xf32>
    %23 = arith.truncf %22 : vector<2x128xf32> to vector<2x128xbf16>
    %c0_17 = arith.constant 0 : index
    %c0_18 = arith.constant 0 : index
    %24 = vector.load %arg8[%c0_17, %c0_18] : memref<2x128xbf16, #tpu.memory_space<vmem>>, vector<2x128xbf16>
    tpu.vector_store %arg8[%c0_17, %c0_18], %23 {strides = array<i32>} : memref<2x128xbf16, #tpu.memory_space<vmem>>, vector<2x128xbf16>,
    return
  }
  func.func @transform_0(%arg0: i32) -> (i32, i32) {
    %c0_i32 = arith.constant 0 : i32
    %c0_i32_0 = arith.constant 0 : i32
    return %arg0, %c0_i32 : i32, i32
  }
  func.func @transform_1(%arg0: i32) -> (i32, i32) {
    %c0_i32 = arith.constant 0 : i32
    %c0_i32_0 = arith.constant 0 : i32
    %c0_i32_1 = arith.constant 0 : i32
    return %c0_i32, %c0_i32_0 : i32, i32
  }
  func.func @transform_2(%arg0: i32) -> (i32, i32) {
    %c0_i32 = arith.constant 0 : i32
    %c0_i32_0 = arith.constant 0 : i32
    %c0_i32_1 = arith.constant 0 : i32
    return %c0_i32, %c0_i32_0 : i32, i32
  }
  func.func @transform_3(%arg0: i32) -> (i32, i32) {
    %c0_i32 = arith.constant 0 : i32
    %c0_i32_0 = arith.constant 0 : i32
    %c0_i32_1 = arith.constant 0 : i32
    return %c0_i32, %c0_i32_0 : i32, i32
  }
  func.func @transform_4(%arg0: i32) -> (i32, i32) {
    %c0_i32 = arith.constant 0 : i32
    %c0_i32_0 = arith.constant 0 : i32
    %c0_i32_1 = arith.constant 0 : i32
    return %c0_i32, %c0_i32_0 : i32, i32
  }
  func.func @transform_5(%arg0: i32) -> (i32, i32) {
    %c0_i32 = arith.constant 0 : i32
    %c0_i32_0 = arith.constant 0 : i32
    %c0_i32_1 = arith.constant 0 : i32
    return %c0_i32, %c0_i32_0 : i32, i32
  }
  func.func @transform_6(%arg0: i32) -> (i32, i32) {
    %c0_i32 = arith.constant 0 : i32
    %c0_i32_0 = arith.constant 0 : i32
    %c0_i32_1 = arith.constant 0 : i32
    return %c0_i32, %c0_i32_0 : i32, i32
  }
  func.func @transform_7(%arg0: i32) -> (i32, i32) {
    %c0_i32 = arith.constant 0 : i32
    %c0_i32_0 = arith.constant 0 : i32
    return %arg0, %c0_i32 : i32, i32
  }
}

</mosaic_0001>

<bundles_post_ra>
// kernel: tpu_custom_call.1
= control target key start
LH: loop header
LB: loop body
LE: loop exit
PB: predicated region body
PF: predicated region fallthrough
CT: control target
= control target key end

     0   :  { %12 = vsyncpa [#allocation3], 0  ;;  %s1317_s0 = inlined_call_operand.vmem [shape: f32[2,784], index: 0, kind: input, shape index: {}]   ;;  %s1318_s1 = inlined_call_operand.hbm [shape: bf16[784,128], index: 1, kind: input, shape index: {}]   ;;  %s1319_s2 = inlined_call_operand.vmem [shape: f32[1,128], index: 2, kind: input, shape index: {}]   ;;  %s1320_s3 = inlined_call_operand.vmem [shape: bf16[128,64], index: 3, kind: input, shape index: {}]   ;;  %s1321_s4 = inlined_call_operand.vmem [shape: f32[1,64], index: 4, kind: input, shape index: {}]   ;;  %s1322_s5 = inlined_call_operand.vmem [shape: bf16[64,128], index: 5, kind: input, shape index: {}]   ;;  %s1323_s6 = inlined_call_operand.vmem [shape: f32[1,128], index: 6, kind: input, shape index: {}]   ;;  %s1324_s7 = inlined_call_operand.hbm [shape: bf16[2,128], index: 7, kind: output, shape index: {}]  }
   0x1   :  { %13 = vsyncpa [#allocation4], 0  ;;  %s1175_s24 = smov [#allocation2]   ;;  %s1127_s28 = scalar_lea.hbm %s1318_s1, 6272 }
   0x2   :  { %s21_s25 = sshll.u32 %s1175_s24, 4  ;;  %p1128_p0 = scmp.ne.s32.totalorder %s1318_s1, %s1127_s28  ;;  %s22_s25 = int_to_ptr.vmem [resolvable:$true] %s21_s25 }
   0x3   :  { %p1131_p1 = scmp.lt.u32.totalorder %s1127_s28, %s1318_s1 }
   0x5   :  { %p1133_p2 = pnand %p1131_p1, %p1128_p0 }
   0x7   :  { %1136 = shalt.err (!%p1133_p2)
}
   0x8   :  { %s1137_s10 = scalar_lea.vmem %s22_s25, 6272  ;;  %p1142_p4 = scmp.lt.s32.totalorder %s22_s25, %s22_s25 }
   0x9   :  { %p1138_p3 = scmp.ne.s32.totalorder %s22_s25, %s1137_s10  ;;  %p1143_p5 = scmp.lt.s32.totalorder %s1137_s10, %s1137_s10 }
   0xb   :  { %p1144_p6 = por %p1143_p5, %p1142_p4 }
   0xd   :  { %p1145_p7 = pnand %p1144_p6, %p1138_p3 }
   0xf   :  { %1148 = shalt.err (!%p1145_p7)
}
  0x10   :  { %s1176_s11 = smov 64   ;;  %s1177_s12 = smov 4  }
  0x11   :  { %27 = dma.hbm_to_vmem [thread:$0]  %s1318_s1, 6272, %s22_s25, [#allocation3], %s1176_s11, %s1176_s11, %s1177_s12  }
  0x12   :  { %1171 = dma.done.wait [#allocation3], 6272  }
  0x13   :  { %1172 = vsyncadd [#allocation3], 4294961024  ;;  %v1064_v0 = vld [vmem:[#allocation2 + $0x40] sm:$0xff]   ;;  %v1068_v4 = vld [vmem:[#allocation2 + $0x48] sm:$0xff]   ;;  %v1178_v21 = vmov 1983009808   ;;  %v50_v23 = vlaneseq }
  0x14   :  { %v1065_v1 = vld [vmem:[#allocation2] sm:$0xff]   ;;  %937 = vmatprep.subr.bf16.mxu0 %v1064_v0  ;;  %v1069_v5 = vld [vmem:[#allocation2 + $0x8] sm:$0xff]   ;;  %v1072_v8 = vld [vmem:[#allocation2 + $0x50] sm:$0xff]   ;;  %v48_v22 = vunpack.c.l.s4 %v1178_v21  ;;  %v1179_v45 = vmov 0.0   ;;  %vm1180_vm0 = vmmov 0   ;;  %vm492_vm1 = vcmask 130048  }
  0x15   :  { %v1066_v2 = vld [vmem:[#allocation2 + $0xc0] sm:$0xff]   ;;  %938 = vmatpush3.bf16.msra.mxu0 %v1065_v1  ;;  %v1070_v6 = vld [vmem:[#allocation2 + $0xc8] sm:$0xff]   ;;  %v1073_v9 = vld [vmem:[#allocation2 + $0x10] sm:$0xff]   ;;  %v51_v29 = vshrl.u32 %v50_v23, 7  ;;  %vm810_vm2 = vcmask 523264  }
  0x16   :  { %v1067_v3 = vld [vmem:[#allocation2 + $0x80] sm:$0xff]   ;;  %959 = vmatprep.subr.bf16.mxu1 %v1066_v2  ;;  %939 = vmatprep.subr.bf16.mxu0 %v1068_v4  ;;  %v1071_v7 = vld [vmem:[#allocation2 + $0x88] sm:$0xff]   ;;  %v1074_v10 = vld [vmem:[#allocation2 + $0xd0] sm:$0xff]   ;;  %v49_v28 = vunpack.c.0.s8 %v48_v22 }
  0x17   :  { %960 = vmatpush3.bf16.msra.mxu1 %v1067_v3  ;;  %v1075_v11 = vld [vmem:[#allocation2 + $0x90] sm:$0xff]   ;;  %v1076_v12 = vld [vmem:[#allocation2 + $0x58] sm:$0xff]   ;;  %v1080_v16 = vld [vmem:[#allocation2 + $0x60] sm:$0xff]  }
  0x18   :  { %961 = vmatprep.subr.bf16.mxu1 %v1070_v6  ;;  %v1077_v13 = vld [vmem:[#allocation2 + $0x18] sm:$0xff]   ;;  %v1081_v17 = vld [vmem:[#allocation2 + $0x20] sm:$0xff]   ;;  %v1084_v20 = vld [vmem:[#allocation2 + $0x68] sm:$0xff]   ;;  %v52_v34 = vsub.s32 %v49_v28, %v51_v29 }
  0x19   :  { %940 = vmatpush3.bf16.msra.mxu0 %v1069_v5  ;;  %v1078_v14 = vld [vmem:[#allocation2 + $0xd8] sm:$0xff]   ;;  %v1082_v18 = vld [vmem:[#allocation2 + $0xe0] sm:$0xff]   ;;  %v1085_v24 = vld [vmem:[#allocation2 + $0x28] sm:$0xff]  }
  0x1a   :  { %941 = vmatprep.subr.bf16.mxu0 %v1072_v8  ;;  %v1079_v15 = vld [vmem:[#allocation2 + $0x98] sm:$0xff]   ;;  %v1083_v19 = vld [vmem:[#allocation2 + $0xa0] sm:$0xff]   ;;  %v1086_v25 = vld [vmem:[#allocation2 + $0xe8] sm:$0xff]  }
  0x1b   :  { %962 = vmatpush3.bf16.msra.mxu1 %v1071_v7  ;;  %v1087_v26 = vld [vmem:[#allocation2 + $0xa8] sm:$0xff]   ;;  %v1088_v27 = vld [vmem:[#allocation2 + $0x70] sm:$0xff]   ;;  %v1092_v33 = vld [vmem:[#allocation2 + $0x78] sm:$0xff]  }
  0x1c   :  { %963 = vmatprep.subr.bf16.mxu1 %v1074_v10  ;;  %v1089_v30 = vld [vmem:[#allocation2 + $0x30] sm:$0xff]   ;;  %v1093_v35 = vld [vmem:[#allocation2 + $0x38] sm:$0xff]   ;;  %v42_v37 = vld [vmem:[%s1317_s0] sm:$0xff] }
  0x1d   :  { %942 = vmatpush3.bf16.msra.mxu0 %v1073_v9  ;;  %v1090_v31 = vld [vmem:[#allocation2 + $0xf0] sm:$0xff]   ;;  %v1094_v36 = vld [vmem:[#allocation2 + $0xf8] sm:$0xff]   ;;  %v53_v38 = vrot.slane %v42_v37, %v52_v34  ;;  %v46_v40 = vcombine.high %v42_v37, %v42_v37  ;;  %v1096_v41 = vld [vmem:[#allocation2 + $0x140] sm:$0xff]  }
  0x1e   :  { %943 = vmatprep.subr.bf16.mxu0 %v1076_v12  ;;  %v1091_v32 = vld [vmem:[#allocation2 + $0xb0] sm:$0xff]   ;;  %v1095_v39 = vld [vmem:[#allocation2 + $0xb8] sm:$0xff]   ;;  %v1098_v48 = vld [vmem:[#allocation2 + $0x100] sm:$0xff]  }
  0x1f   :  { %964 = vmatpush3.bf16.msra.mxu1 %v1075_v11  ;;  %v61_v42 = vcombine.high %v53_v38, %v53_v38  ;;  %v60_v43 = vrot.slane %v46_v40, %v52_v34  ;;  %v86_v44 = vpack.c.bf16 %v53_v38, %v53_v38  ;;  %v1099_v50 = vld [vmem:[#allocation2 + $0x148] sm:$0xff]   ;;  %v1101_v53 = vld [vmem:[#allocation2 + $0x150] sm:$0xff]   ;;  %v1103_v55 = vld [vmem:[#allocation2 + $0x158] sm:$0xff]  }
  0x20   :  { %965 = vmatprep.subr.bf16.mxu1 %v1078_v14  ;;  %v1100_v52 = vld [vmem:[#allocation2 + $0x108] sm:$0xff]   ;;  %v1102_v54 = vld [vmem:[#allocation2 + $0x110] sm:$0xff]   ;;  %v1104_v56 = vld [vmem:[#allocation2 + $0x118] sm:$0xff]  }
  0x21   :  { %944 = vmatpush3.bf16.msra.mxu0 %v1077_v13  ;;  %v87_v46 = vpack.c.bf16 %v61_v42, %v61_v42  ;;  %v62_v47 = vcombine.high %v60_v43, %v60_v43  ;;  %v88_v49 = vpack.c.bf16 %v60_v43, %v60_v43  ;;  %v1105_v57 = vld [vmem:[#allocation2 + $0x160] sm:$0xff]   ;;  %v43_v59 = vld [vmem:[%s1317_s0 + $0x8] sm:$0x3f]  ;;  %v1109_v5 = vld [vmem:[#allocation2 + $0x170] sm:$0xff]  }
  0x22   :  { %945 = vmatprep.subr.bf16.mxu0 %v1080_v16  ;;  %v1113_v58 = vld [vmem:[#allocation2 + $0x180] sm:$0xff]   ;;  %v63_v61 = vcombine.high %v43_v59, %v43_v59  ;;  %v70_v62 = vrot.slane %v43_v59, %v52_v34  ;;  %v1107_v63 = vld [vmem:[#allocation2 + $0x168] sm:$0xff]   ;;  %v1110_v6 = vld [vmem:[#allocation2 + $0x130] sm:$0xff]  }
  0x23   :  { %966 = vmatpush3.bf16.msra.mxu1 %v1079_v15  ;;  %528 = vmatprep.mubr.bf16.mxu0 %v87_v46  ;;  %v89_v51 = vpack.c.bf16 %v62_v47, %v62_v47  ;;  %v1106_v60 = vld [vmem:[#allocation2 + $0x120] sm:$0xff]   ;;  %v1108_v2 = vld [vmem:[#allocation2 + $0x128] sm:$0xff]   ;;  %v1111_v7 = vld [vmem:[#allocation2 + $0x178] sm:$0xff]  }
  0x24   :  { %967 = vmatprep.subr.bf16.mxu1 %v1082_v18  ;;  %v77_v0 = vrot.slane %v63_v61, %v52_v34  ;;  %v78_v1 = vcombine.high %v70_v62, %v70_v62  ;;  %v1112_v8 = vld [vmem:[#allocation2 + $0x138] sm:$0xff]   ;;  %v90_v9 = vpack.c.bf16 %v70_v62, %v70_v62  ;;  %v1115_v10 = vld [vmem:[%s1320_s3] sm:$0xff]   ;;  %v1116_v11 = vld [vmem:[%s1320_s3 + $0x8] sm:$0xff]  }
  0x25   :  { %946 = vmatpush3.bf16.msra.mxu0 %v1081_v17  ;;  %568 = vmatprep.mubr.bf16.mxu1 %v89_v51  ;;  %v1117_v12 = vld [vmem:[%s1320_s3 + $0x10] sm:$0xff]   ;;  %v1118_v13 = vld [vmem:[%s1320_s3 + $0x18] sm:$0xff]   ;;  %v1119_v14 = vld [vmem:[%s1320_s3 + $0x20] sm:$0xff]  }
  0x26   :  { %947 = vmatprep.subr.bf16.mxu0 %v1084_v20  ;;  %v91_v3 = vpack.c.bf16 %v78_v1, %v78_v1  ;;  %v92_v4 = vpack.c.bf16 %v77_v0, %v77_v0  ;;  %v1120_v15 = vld [vmem:[%s1320_s3 + $0x28] sm:$0xff]   ;;  %v1121_v16 = vld [vmem:[%s1320_s3 + $0x30] sm:$0xff]   ;;  %v1122_v17 = vld [vmem:[%s1320_s3 + $0x38] sm:$0xff]  }
  0x27   :  { %968 = vmatpush3.bf16.msra.mxu1 %v1083_v19  ;;  %v1123_v18 = vld [vmem:[%s1322_s5] sm:$0xff]   ;;  %v1124_v19 = vld [vmem:[%s1322_s5 + $0x8] sm:$0xff]   ;;  %v1125_v47 = vld [vmem:[%s1322_s5 + $0x10] sm:$0xff]  }
  0x28   :  { %969 = vmatprep.subr.bf16.mxu1 %v1086_v25  ;;  %v871_v21 = vld [vmem:[%s1319_s2] ss:$0 sm:$0xff] }
  0x29   :  { %948 = vmatpush3.bf16.msra.mxu0 %v1085_v24 }
  0x2a   :  { %949 = vmatprep.subr.bf16.mxu0 %v1088_v27 }
  0x2b   :  { %970 = vmatpush3.bf16.msra.mxu1 %v1087_v26 }
  0x2c   :  { %971 = vmatprep.subr.bf16.mxu1 %v1090_v31 }
  0x2d   :  { %950 = vmatpush3.bf16.msra.mxu0 %v1089_v30 }
  0x2e   :  { %951 = vmatprep.subr.bf16.mxu0 %v1092_v33 }
  0x2f   :  { %972 = vmatpush3.bf16.msra.mxu1 %v1091_v32 }
  0x30   :  { %973 = vmatprep.subr.bf16.mxu1 %v1094_v36 }
  0x31   :  { %952 = vmatpush3.bf16.msra.mxu0 %v1093_v35 }
  0x32   :  { %981 = vmatprep.subr.bf16.mxu0 %v1096_v41 }
  0x33   :  { %974 = vmatpush3.bf16.msra.mxu1 %v1095_v39 }
  0x34   :  { %1019 = vmatprep.subr.bf16.mxu1 %v1179_v45  ;;  %529 = vmatmul.mubr.bf16.vlgmr.msra.gmra.mrb[0].mxu0 %v86_v44 }
  0x35   :  { %982 = vmatpush3.bf16.msra.mxu0 %v1098_v48  ;;  %608 = vmatprep.mubr.bf16.mxu0 %v91_v3  ;;  %v1126_v48 = vld [vmem:[%s1322_s5 + $0x18] sm:$0xff]   ;;  %s1181_s5 = smov [#allocation5]  }
  0x36   :  { %569 = vmatmul.mubr.bf16.vlgmr.msra.gmra.mrb[0].mxu1 %v88_v49  ;;  %983 = vmatprep.subr.bf16.mxu0 %v1099_v50  ;;  %v922_v49 = vld [vmem:[%s1321_s4] ss:$0 sm:$0xff]  ;;  %s862_s20 = sshll.u32 %s1181_s5, 4  ;;  %s863_s20 = int_to_ptr.vmem [resolvable:$true] %s862_s20 }
  0x37   :  { %1021 = vmatprep.mubr.msk.bf16.mxu1 %vm1180_vm0, %v1179_v45  ;;  %1020 = vmatpush3.bf16.msra.mxu1 %v1113_v58  ;;  %s1149_s4 = scalar_lea.vmem %s863_s20, 16  ;;  %s1153_s21 = scalar_lea.vmem %s863_s20, 32 }
  0x38   :  { %1025 = vmatprep.subr.bf16.mxu1 %v1179_v45  ;;  %p1150_p8 = scmp.ne.s32.totalorder %s863_s20, %s1149_s4  ;;  %p1154_p9 = scmp.lt.s32.totalorder %s863_s20, %s863_s20 }
  0x39   :  { %984 = vmatpush3.bf16.msra.mxu0 %v1100_v52  ;;  %p1155_p10 = scmp.lt.s32.totalorder %s1153_s21, %s1149_s4 }
  0x3a   :  { %985 = vmatprep.subr.bf16.mxu0 %v1101_v53 }
  0x3b   :  { %p1156_p11 = por %p1155_p10, %p1154_p9 }
  0x3d   :  { %986 = vmatpush3.bf16.msra.mxu0 %v1102_v54  ;;  %p1157_p12 = pnand %p1156_p11, %p1150_p8 }
  0x3e   :  { %987 = vmatprep.subr.bf16.mxu0 %v1103_v55  ;;  %1022 = vmatmul.mubr.msk.bf16.vlgmr.msra.gmra.mrb[4].mxu1 %vm492_vm1, %v92_v4 }
  0x3f   :  { %1041 = vmatprep.mubr.msk.bf16.mxu1 %vm1180_vm0, %v1179_v45  ;;  %1026 = vmatpush3.bf16.msra.mxu1 %v1115_v10 }
  0x40   :  { %1027 = vmatprep.subr.bf16.mxu1 %v1179_v45 }
  0x41   :  { %988 = vmatpush3.bf16.msra.mxu0 %v1104_v56 }
  0x42   :  { %989 = vmatprep.subr.bf16.mxu0 %v1105_v57 }
  0x43   :  { %1028 = vmatpush3.bf16.msra.mxu1 %v1116_v11 }
  0x44   :  { %1029 = vmatprep.subr.bf16.mxu1 %v1179_v45 }
  0x45   :  { %990 = vmatpush3.bf16.msra.mxu0 %v1106_v60 }
  0x46   :  { %991 = vmatprep.subr.bf16.mxu0 %v1107_v63 }
  0x47   :  { %1030 = vmatpush3.bf16.msra.mxu1 %v1117_v12 }
  0x48   :  { %1031 = vmatprep.subr.bf16.mxu1 %v1179_v45 }
  0x49   :  { %992 = vmatpush3.bf16.msra.mxu0 %v1108_v2 }
  0x4a   :  { %993 = vmatprep.subr.bf16.mxu0 %v1109_v5 }
  0x4b   :  { %1032 = vmatpush3.bf16.msra.mxu1 %v1118_v13 }
  0x4c   :  { %1033 = vmatprep.subr.bf16.mxu1 %v1179_v45 }
  0x4d   :  { %994 = vmatpush3.bf16.msra.mxu0 %v1110_v6 }
  0x4e   :  { %995 = vmatprep.subr.bf16.mxu0 %v1111_v7 }
  0x4f   :  { %1034 = vmatpush3.bf16.msra.mxu1 %v1119_v14 }
  0x50   :  { %1035 = vmatprep.subr.bf16.mxu1 %v1179_v45 }
  0x51   :  { %996 = vmatpush3.bf16.msra.mxu0 %v1112_v8 }
  0x52   :  { %1045 = vmatprep.subr.bf16.mxu0 %v1179_v45 }
  0x53   :  { %1036 = vmatpush3.bf16.msra.mxu1 %v1120_v15 }
  0x54   :  { %609 = vmatmul.mubr.bf16.vlgmr.msra.gmra.mrb[4].mxu0 %v90_v9  ;;  %1037 = vmatprep.subr.bf16.mxu1 %v1179_v45 }
  0x55   :  { %1053 = vmatprep.mubr.msk.bf16.mxu0 %vm1180_vm0, %v1179_v45  ;;  %1046 = vmatpush3.bf16.msra.mxu0 %v1123_v18 }
  0x56   :  { %1047 = vmatprep.subr.bf16.mxu0 %v1179_v45 }
  0x57   :  { %1038 = vmatpush3.bf16.msra.mxu1 %v1121_v16 }
  0x58   :  { %1039 = vmatprep.subr.bf16.mxu1 %v1179_v45 }
  0x59   :  { %1048 = vmatpush3.bf16.msra.mxu0 %v1124_v19 }
  0x5a   :  { %1049 = vmatprep.subr.bf16.mxu0 %v1179_v45 }
  0x5b   :  { %1040 = vmatpush3.bf16.msra.mxu1 %v1122_v17 }
  0x5d   :  { %1050 = vmatpush3.bf16.msra.mxu0 %v1125_v47 }
  0x5e   :  { %1051 = vmatprep.subr.bf16.mxu0 %v1179_v45  ;;  %v931_v45 = vld [vmem:[%s1323_s6] ss:$0 sm:$0xff] }
  0x61   :  { %1052 = vmatpush3.bf16.msra.mxu0 %v1126_v48 }
 0x107   :  { %v953_v20 = vpop.f32.mrb[0].mxu0 }
 0x108   :  { %v954_v22 = vpop.f32.mrb[1].mxu0 }
 0x109   :  { %v955_v23 = vadd.f32 %v954_v22, %v953_v20  ;;  %v956_v24 = vpop.f32.mrb[2].mxu0  ;;  %v975_v25 = vpop.f32.mrb[0].mxu1 }
 0x10a   :  { %v957_v26 = vpop.f32.mrb[3].mxu0  ;;  %v976_v27 = vpop.f32.mrb[1].mxu1 }
 0x10b   :  { %v531_v28 = vadd.f32 %v955_v23, %v871_v21  ;;  %v977_v29 = vadd.f32 %v976_v27, %v975_v25  ;;  %v978_v30 = vpop.f32.mrb[2].mxu1 }
 0x10c   :  { %v979_v31 = vpop.f32.mrb[3].mxu1 }
 0x10d   :  { %v571_v32 = vadd.f32 %v977_v29, %v531_v28 }
 0x111   :  { %v650_v33 = vpop.f32.mrb[4].mxu1 }
 0x112   :  { %v1023_v34 = vpop.f32.mrb[5].mxu1 }
 0x113   :  { %v653_v35 = vpop.f32.mrb[6].mxu1 }
 0x114   :  { %v1024_v36 = vpop.f32.mrb[7].mxu1 }
 0x127   :  { %v997_v37 = vpop.f32.mrb[4].mxu0 }
 0x128   :  { %v998_v38 = vpop.f32.mrb[5].mxu0 }
 0x129   :  { %v999_v39 = vadd.f32 %v998_v38, %v997_v37  ;;  %v1000_v40 = vpop.f32.mrb[6].mxu0 }
 0x12a   :  { %v1001_v41 = vpop.f32.mrb[7].mxu0 }
 0x12b   :  { %v611_v42 = vadd.f32 %v999_v39, %v571_v32 }
 0x12d   :  { %v651_v43 = vadd.f32 %v650_v33, %v611_v42 }
 0x12f   :  { %v656_v44 = vmax.f32 %v651_v43, 0.0 }
 0x131   :  { %v657_v46 = vpack.c.bf16 %v656_v44, %v656_v44 }
 0x133   :  { %1042 = vmatmul.mubr.bf16.vlgmr.msra.gmra.mrb[8].mxu1 %v657_v46 }
 0x206   :  { %v763_v50 = vpop.f32.mrb[8].mxu1 }
 0x207   :  { %v764_v51 = vadd.f32 %v922_v49, %v763_v50  ;;  %v1043_v52 = vpop.f32.mrb[9].mxu1 }
 0x208   :  { %v766_v53 = vpop.f32.mrb[10].mxu1 }
 0x209   :  { %v769_v54 = vmax.f32 %v764_v51, 0.0  ;;  %v1044_v55 = vpop.f32.mrb[11].mxu1 }
 0x20b   :  { %v770_v56 = vpack.c.bf16 %v769_v54, %v769_v54 }
 0x20d   :  { %1054 = vmatmul.mubr.msk.bf16.vlgmr.msra.gmra.mrb[8].mxu0 %vm810_vm2, %v770_v56 }
 0x2e0   :  { %v848_v57 = vpop.f32.mrb[8].mxu0 }
 0x2e1   :  { %v849_v58 = vadd.f32 %v931_v45, %v848_v57  ;;  %v1055_v59 = vpop.f32.mrb[9].mxu0 }
 0x2e2   :  { %v851_v60 = vpop.f32.mrb[10].mxu0 }
 0x2e3   :  { %v854_v61 = vpack.c.bf16 %v849_v58, %v849_v58  ;;  %v1056_v62 = vpop.f32.mrb[11].mxu0 }
 0x2e5   :  { %855 = vst [vmem:[#allocation5] sm:$0x1] %v854_v61 }
 0x2e6   :  { %1160 = shalt.err (!%p1157_p12)
}
 0x2e7   :  { %s1161_s23 = scalar_lea.hbm %s1324_s7, 16 }
 0x2e8   :  { %p1162_p13 = scmp.ne.s32.totalorder %s1324_s7, %s1161_s23  ;;  %p1165_p0 = scmp.lt.u32.totalorder %s1161_s23, %s1324_s7 }
 0x2ea   :  { %p1167_p1 = pnand %p1165_p0, %p1162_p13 }
 0x2ec   :  { %1170 = shalt.err (!%p1167_p1)
}
 0x2ed   :  { %865 = dma.vmem_to_hbm [thread:$0]  %s863_s20, 16, %s1324_s7, [#allocation4]  }
 0x2ee   :  { %1173 = dma.done.wait [#allocation4], 16  }
 0x2ef   :  { %1174 = vsyncadd [#allocation4], 4294967280 }
 0x2f0   :  { %869 = vsyncpa [#allocation3], 1 }
 0x2f1   :  { %870 = vsyncpa [#allocation4], 1 }

</bundles_post_ra>
